<compile_context>
chip_gen: v7x
topology: tpu7x:2x2x1
jax: 0.10.0
libtpu: 0.0.40
codegen_flags: <defaults>
</compile_context>

<pallas_src>
import functools

import jax
import jax.numpy as jnp
from jax.experimental import pallas as pl
from jax.experimental.pallas import tpu as pltpu

ROW_ALIGN = 16   # row-tile alignment: covers f32 (8) and bf16 (16) sublane packing


def _round_up(x, m):
    return (x + m - 1) // m * m


def _mlp_kernel(num_layers, x_ref, *refs):
    """Fused MLP hot path for one (tm, in_dim) activation tile.

    refs = (w0, b0, w1, b1, ..., w{L-1}, b{L-1}, out_ref).
    Weights are in the MXU dtype (bf16 by default), biases f32.  Matmuls
    accumulate in f32; bias-add + ReLU run on the f32 accumulator; the
    inter-layer activation is carried in the MXU dtype to bound the live
    VMEM/vreg footprint of the unrolled layer chain.
    """
    out_ref = refs[-1]
    wb = refs[:-1]

    h = x_ref[...]
    for i in range(num_layers):
        w = wb[2 * i][...]
        b = wb[2 * i + 1][...]
        acc = jnp.dot(h.astype(w.dtype), w,
                      preferred_element_type=jnp.float32) + b
        if i < num_layers - 1:
            h = jnp.maximum(acc, 0.0).astype(w.dtype)     # ReLU in f32 -> MXU dtype
        else:
            h = acc
    out_ref[...] = h.astype(out_ref.dtype)
    # TODO(synk): for very large tm x hidden, ping-pong the inter-layer
    # activation through explicit VMEM scratch instead of compiler-managed
    # temporaries of the unrolled chain.
    # TODO(synk): for out_dim << 128, fold several rows' outputs into one
    # lane-dense row in the out layout and unfold in the wrapper.


def pack_mlp_params(weights, biases, mxu_dtype=jnp.bfloat16):
    """One-time parameter packing (call OUTSIDE the per-forward hot path).

    weights[i]: (in_dim_i, out_dim_i) for x @ W + b; biases[i]: (out_dim_i,).
    Weights are cast to the MXU input dtype (bf16 by default; pass
    mxu_dtype=jnp.float32 for full f32 validation parity).  Biases stay f32 and
    are reshaped to (1, d) so the add broadcasts on the f32 accumulator.
    """
    assert len(weights) == len(biases)
    packed = []
    for w, b in zip(weights, biases):
        assert w.ndim == 2 and b.shape == (w.shape[1],)
        packed.append(jnp.asarray(w, mxu_dtype))
        packed.append(jnp.asarray(b, jnp.float32).reshape(1, -1))
    return tuple(packed)


def _choose_tm(m, tm_max):
    tm_max = max(ROW_ALIGN, _round_up(tm_max, ROW_ALIGN))
    # Give the two TensorCores on megacore parts (v7x) at least one block each
    # when there is enough work; otherwise one block covers everything.
    half = _round_up(max(pl.cdiv(m, 2), 1), ROW_ALIGN)
    return min(tm_max, half)


def _derive_vmem_limit(tm, dims, x_bytes, out_bytes, w_elem_bytes, weight_buffers):
    """Size vmem_limit_bytes from actual resident/streamed bytes, capped by HW."""
    n_layers = len(dims) - 1
    w_bytes = sum(dims[i] * dims[i + 1] for i in range(n_layers)) * w_elem_bytes
    b_bytes = 4 * sum(dims[1:])
    resident = max(weight_buffers, 1) * w_bytes + 2 * b_bytes
    streamed = 2 * tm * (dims[0] * x_bytes + dims[-1] * out_bytes)  # dbl-buffered x/out
    interm = 4 * tm * max(dims) * 4                                 # f32 intermediates headroom
    need = resident + streamed + interm + (4 << 20)
    try:
        cap = int(pltpu.get_tpu_info().vmem_capacity_bytes)         # 64 MiB v7x, 128 MiB v5e/v6e
    except Exception:
        cap = 64 << 20                                              # conservative (v7x-sized)
    return int(max(32 << 20, min(need, int(cap * 0.85))))


def mlp_pallas(x, packed_params, *, tm=1024, out_dtype=None,
               weight_buffer_count=1, vmem_limit_bytes=None):
    """Fused MLP forward: x (..., in_dim) -> (..., out_dim).

    packed_params comes from pack_mlp_params.  x is streamed in its own dtype
    (pass bf16 activations to halve streaming HBM traffic); accumulation is f32
    regardless of input/weight dtype.
    """
    num_layers = len(packed_params) // 2
    assert num_layers * 2 == len(packed_params) and num_layers >= 1
    w_list = [packed_params[2 * i] for i in range(num_layers)]

    orig_shape = x.shape
    in_dim = orig_shape[-1]
    dims = [in_dim] + [w.shape[1] for w in w_list]
    for i, w in enumerate(w_list):
        assert w.shape[0] == dims[i], (i, w.shape, dims)
    out_dim = dims[-1]
    out_dtype = x.dtype if out_dtype is None else jnp.dtype(out_dtype)

    x2d = x.reshape(-1, in_dim)          # no copies: no M padding, no K padding
    m = x2d.shape[0]
    tm_eff = _choose_tm(m, tm)
    grid_m = pl.cdiv(m, tm_eff)          # ragged last block masked by Pallas

    if vmem_limit_bytes is None:
        vmem_limit_bytes = _derive_vmem_limit(
            tm_eff, dims, x2d.dtype.itemsize, out_dtype.itemsize,
            w_list[0].dtype.itemsize,
            2 if weight_buffer_count is None else weight_buffer_count)

    kernel = functools.partial(_mlp_kernel, num_layers)
    out_shape = jax.ShapeDtypeStruct((m, out_dim), out_dtype)

    def call(wb_buffers):
        # x / out: tiled + pipelined along M.  Weights / biases: constant block
        # index (full-array blocks) -> DMA'd once, VMEM-resident across the
        # whole grid; single-buffered when pipeline_mode is supported.
        pm = None if wb_buffers is None else pl.Buffered(wb_buffers)
        in_specs = [pl.BlockSpec((tm_eff, in_dim), lambda i: (i, 0))]
        for li in range(num_layers):
            for arr in (packed_params[2 * li], packed_params[2 * li + 1]):
                if pm is None:
                    in_specs.append(pl.BlockSpec(arr.shape, lambda i: (0, 0)))
                else:
                    in_specs.append(pl.BlockSpec(arr.shape, lambda i: (0, 0),
                                                 pipeline_mode=pm))
        out_spec = pl.BlockSpec((tm_eff, out_dim), lambda i: (i, 0))
        return pl.pallas_call(
            kernel,
            out_shape=out_shape,
            grid_spec=pltpu.PrefetchScalarGridSpec(
                num_scalar_prefetch=0,
                grid=(grid_m,),
                in_specs=in_specs,
                out_specs=out_spec,
            ),
            compiler_params=pltpu.CompilerParams(
                dimension_semantics=("parallel",),   # megacore sharding on v7x
                vmem_limit_bytes=vmem_limit_bytes,
            ),
        )(x2d, *packed_params)

    if weight_buffer_count is None:
        out = call(None)
    else:
        try:
            out = call(weight_buffer_count)
        except Exception:
            # pipeline_mode / Buffered(1) unsupported by this JAX version:
            # fall back to default double-buffered resident weights (identical
            # numerics, slightly larger VMEM footprint).
            out = call(None)

    return out.reshape(*orig_shape[:-1], out_dim)


def init_mlp_params(key, input_dim, hidden_dim, output_dim, num_layers,
                    dtype=jnp.float32):
    """Deterministic init mimicking nn.Linear default (uniform +-1/sqrt(fan_in))."""
    h = [hidden_dim] * (num_layers - 1)
    dims_in = [input_dim] + h
    dims_out = h + [output_dim]
    weights, biases = [], []
    for n, k in zip(dims_in, dims_out):
        key, kw, kb = jax.random.split(key, 3)
        bound = 1.0 / (n ** 0.5)
        weights.append(jax.random.uniform(kw, (n, k), dtype, -bound, bound))
        biases.append(jax.random.uniform(kb, (k,), dtype, -bound, bound))
    return weights, biases


def mlp_reference(x, weights, biases, mxu_dtype=jnp.float32):
    """Pure-JAX reference. mxu_dtype=bf16 mirrors the kernel's matmul precision."""
    h = x.astype(jnp.float32)
    for i, (w, b) in enumerate(zip(weights, biases)):
        h = jnp.dot(h.astype(mxu_dtype), w.astype(mxu_dtype),
                    preferred_element_type=jnp.float32,
                    precision=jax.lax.Precision.HIGHEST) + b.astype(jnp.float32)
        if i < len(weights) - 1:
            h = jnp.maximum(h, 0.0)
    return h.astype(x.dtype)


if __name__ == "__main__":
    key = jax.random.PRNGKey(0)

    # m = 2*9 = 18 rows: exercises the 2-block megacore split AND the ragged
    # (unpadded) last block path.
    batch, seq = 2, 9
    input_dim, hidden_dim, output_dim, num_layers = 32, 64, 16, 3

    key, kx = jax.random.split(key)
    x = jax.random.normal(kx, (batch, seq, input_dim), dtype=jnp.float32)

    weights, biases = init_mlp_params(
        key, input_dim, hidden_dim, output_dim, num_layers)

    # Pack parameters once (bf16 MXU feed) -- outside the per-call hot path.
    params_bf16 = pack_mlp_params(weights, biases)

    out = jax.block_until_ready(mlp_pallas(x, params_bf16))
    assert out.shape == (batch, seq, output_dim), out.shape
    assert out.dtype == x.dtype

    ref_bf16 = mlp_reference(x, weights, biases, mxu_dtype=jnp.bfloat16)
    ref_f32 = mlp_reference(x, weights, biases, mxu_dtype=jnp.float32)

    # Tight check vs a reference with identical (bf16-in, f32-acc) matmuls.
    assert jnp.allclose(out, ref_bf16, atol=1e-3, rtol=1e-3), \
        float(jnp.max(jnp.abs(out - ref_bf16)))
    # Loose check vs full-f32 PyTorch semantics (bf16 weight rounding only).
    assert jnp.allclose(out, ref_f32, atol=1e-1, rtol=1e-1), \
        float(jnp.max(jnp.abs(out - ref_f32)))

    # f32-weight validation mode: near-exact parity with f32 nn.Linear.
    params_f32 = pack_mlp_params(weights, biases, mxu_dtype=jnp.float32)
    out_f32 = jax.block_until_ready(mlp_pallas(x, params_f32))
    assert jnp.allclose(out_f32, ref_f32, atol=1e-3, rtol=1e-3), \
        float(jnp.max(jnp.abs(out_f32 - ref_f32)))

    # bf16 activation streaming (halves x-side HBM traffic on the mem-bound path).
    out_bf16_in = jax.block_until_ready(
        mlp_pallas(x.astype(jnp.bfloat16), params_bf16, out_dtype=jnp.float32))
    assert out_bf16_in.shape == (batch, seq, output_dim)
    assert jnp.allclose(out_bf16_in, ref_f32, atol=1e-1, rtol=1e-1)

    print("KERNEL_OK")
</pallas_src>

<mosaic_0001>
module attributes {stable_mosaic.version = 11 : i64} {
  func.func @_mlp_kernel(%arg0: i32, %arg1: memref<16x32xf32, #tpu.memory_space<vmem>>, %arg2: memref<32x64xbf16, #tpu.memory_space<vmem>>, %arg3: memref<1x64xf32, #tpu.memory_space<vmem>>, %arg4: memref<64x64xbf16, #tpu.memory_space<vmem>>, %arg5: memref<1x64xf32, #tpu.memory_space<vmem>>, %arg6: memref<64x16xbf16, #tpu.memory_space<vmem>>, %arg7: memref<1x16xf32, #tpu.memory_space<vmem>>, %arg8: memref<16x16xf32, #tpu.memory_space<vmem>>) attributes {dimension_semantics = [#tpu.dimension_semantics<parallel>], iteration_bounds = array<i64: 2>, scalar_prefetch = 0 : i64, scratch_operands = 0 : i64, tpu.core_type = #tpu.core_type<tc>, window_params = [{transform_indices = @transform_0, window_bounds = array<i64: 16, 32>}, {pipeline_mode = #tpu.pipeline_mode<synchronous>, transform_indices = @transform_1, window_bounds = array<i64: 32, 64>}, {pipeline_mode = #tpu.pipeline_mode<synchronous>, transform_indices = @transform_2, window_bounds = array<i64: 1, 64>}, {pipeline_mode = #tpu.pipeline_mode<synchronous>, transform_indices = @transform_3, window_bounds = array<i64: 64, 64>}, {pipeline_mode = #tpu.pipeline_mode<synchronous>, transform_indices = @transform_4, window_bounds = array<i64: 1, 64>}, {pipeline_mode = #tpu.pipeline_mode<synchronous>, transform_indices = @transform_5, window_bounds = array<i64: 64, 16>}, {pipeline_mode = #tpu.pipeline_mode<synchronous>, transform_indices = @transform_6, window_bounds = array<i64: 1, 16>}, {transform_indices = @transform_7, window_bounds = array<i64: 16, 16>}]} {
    %c0 = arith.constant 0 : index
    %c0_0 = arith.constant 0 : index
    %0 = vector.load %arg1[%c0, %c0_0] : memref<16x32xf32, #tpu.memory_space<vmem>>, vector<16x32xf32>
    %c0_1 = arith.constant 0 : index
    %c0_2 = arith.constant 0 : index
    %1 = vector.load %arg2[%c0_1, %c0_2] : memref<32x64xbf16, #tpu.memory_space<vmem>>, vector<32x64xbf16>
    %c0_3 = arith.constant 0 : index
    %c0_4 = arith.constant 0 : index
    %2 = vector.load %arg3[%c0_3, %c0_4] : memref<1x64xf32, #tpu.memory_space<vmem>>, vector<1x64xf32>
    %3 = arith.truncf %0 : vector<16x32xf32> to vector<16x32xbf16>
    %cst = arith.constant dense<0.000000e+00> : vector<16x64xf32>
    %4 = tpu.matmul %3, %1, %cst {dimension_numbers = #tpu.dot_dimension_numbers<[1], [0], [0], [1], [0, 0, 1, 1], [], []>} : vector<16x32xbf16>, vector<32x64xbf16>, vector<16x64xf32> -> vector<16x64xf32>
    %5 = vector.broadcast %2 : vector<1x64xf32> to vector<16x64xf32>
    %6 = arith.addf %4, %5 : vector<16x64xf32>
    %cst_5 = arith.constant 0.000000e+00 : f32
    %7 = vector.broadcast %cst_5 : f32 to vector<16x64xf32>
    %8 = arith.maximumf %6, %7 : vector<16x64xf32>
    %9 = arith.truncf %8 : vector<16x64xf32> to vector<16x64xbf16>
    %c0_6 = arith.constant 0 : index
    %c0_7 = arith.constant 0 : index
    %10 = vector.load %arg4[%c0_6, %c0_7] : memref<64x64xbf16, #tpu.memory_space<vmem>>, vector<64x64xbf16>
    %c0_8 = arith.constant 0 : index
    %c0_9 = arith.constant 0 : index
    %11 = vector.load %arg5[%c0_8, %c0_9] : memref<1x64xf32, #tpu.memory_space<vmem>>, vector<1x64xf32>
    %cst_10 = arith.constant dense<0.000000e+00> : vector<16x64xf32>
    %12 = tpu.matmul %9, %10, %cst_10 {dimension_numbers = #tpu.dot_dimension_numbers<[1], [0], [0], [1], [0, 0, 1, 1], [], []>} : vector<16x64xbf16>, vector<64x64xbf16>, vector<16x64xf32> -> vector<16x64xf32>
    %13 = vector.broadcast %11 : vector<1x64xf32> to vector<16x64xf32>
    %14 = arith.addf %12, %13 : vector<16x64xf32>
    %cst_11 = arith.constant 0.000000e+00 : f32
    %15 = vector.broadcast %cst_11 : f32 to vector<16x64xf32>
    %16 = arith.maximumf %14, %15 : vector<16x64xf32>
    %17 = arith.truncf %16 : vector<16x64xf32> to vector<16x64xbf16>
    %c0_12 = arith.constant 0 : index
    %c0_13 = arith.constant 0 : index
    %18 = vector.load %arg6[%c0_12, %c0_13] : memref<64x16xbf16, #tpu.memory_space<vmem>>, vector<64x16xbf16>
    %c0_14 = arith.constant 0 : index
    %c0_15 = arith.constant 0 : index
    %19 = vector.load %arg7[%c0_14, %c0_15] : memref<1x16xf32, #tpu.memory_space<vmem>>, vector<1x16xf32>
    %cst_16 = arith.constant dense<0.000000e+00> : vector<16x16xf32>
    %20 = tpu.matmul %17, %18, %cst_16 {dimension_numbers = #tpu.dot_dimension_numbers<[1], [0], [0], [1], [0, 0, 1, 1], [], []>} : vector<16x64xbf16>, vector<64x16xbf16>, vector<16x16xf32> -> vector<16x16xf32>
    %21 = vector.broadcast %19 : vector<1x16xf32> to vector<16x16xf32>
    %22 = arith.addf %20, %21 : vector<16x16xf32>
    %c0_17 = arith.constant 0 : index
    %c0_18 = arith.constant 0 : index
    %23 = vector.load %arg8[%c0_17, %c0_18] : memref<16x16xf32, #tpu.memory_space<vmem>>, vector<16x16xf32>
    tpu.vector_store %arg8[%c0_17, %c0_18], %22 {strides = array<i32>} : memref<16x16xf32, #tpu.memory_space<vmem>>, vector<16x16xf32>,
    return
  }
  func.func @transform_0(%arg0: i32) -> (i32, i32) {
    %c0_i32 = arith.constant 0 : i32
    %c0_i32_0 = arith.constant 0 : i32
    return %arg0, %c0_i32 : i32, i32
  }
  func.func @transform_1(%arg0: i32) -> (i32, i32) {
    %c0_i32 = arith.constant 0 : i32
    %c0_i32_0 = arith.constant 0 : i32
    %c0_i32_1 = arith.constant 0 : i32
    return %c0_i32, %c0_i32_0 : i32, i32
  }
  func.func @transform_2(%arg0: i32) -> (i32, i32) {
    %c0_i32 = arith.constant 0 : i32
    %c0_i32_0 = arith.constant 0 : i32
    %c0_i32_1 = arith.constant 0 : i32
    return %c0_i32, %c0_i32_0 : i32, i32
  }
  func.func @transform_3(%arg0: i32) -> (i32, i32) {
    %c0_i32 = arith.constant 0 : i32
    %c0_i32_0 = arith.constant 0 : i32
    %c0_i32_1 = arith.constant 0 : i32
    return %c0_i32, %c0_i32_0 : i32, i32
  }
  func.func @transform_4(%arg0: i32) -> (i32, i32) {
    %c0_i32 = arith.constant 0 : i32
    %c0_i32_0 = arith.constant 0 : i32
    %c0_i32_1 = arith.constant 0 : i32
    return %c0_i32, %c0_i32_0 : i32, i32
  }
  func.func @transform_5(%arg0: i32) -> (i32, i32) {
    %c0_i32 = arith.constant 0 : i32
    %c0_i32_0 = arith.constant 0 : i32
    %c0_i32_1 = arith.constant 0 : i32
    return %c0_i32, %c0_i32_0 : i32, i32
  }
  func.func @transform_6(%arg0: i32) -> (i32, i32) {
    %c0_i32 = arith.constant 0 : i32
    %c0_i32_0 = arith.constant 0 : i32
    %c0_i32_1 = arith.constant 0 : i32
    return %c0_i32, %c0_i32_0 : i32, i32
  }
  func.func @transform_7(%arg0: i32) -> (i32, i32) {
    %c0_i32 = arith.constant 0 : i32
    %c0_i32_0 = arith.constant 0 : i32
    return %arg0, %c0_i32 : i32, i32
  }
}

module attributes {stable_mosaic.version = 11 : i64} {
  func.func @_mlp_kernel(%arg0: i32, %arg1: memref<16x32xf32, #tpu.memory_space<vmem>>, %arg2: memref<32x64xbf16, #tpu.memory_space<vmem>>, %arg3: memref<1x64xf32, #tpu.memory_space<vmem>>, %arg4: memref<64x64xbf16, #tpu.memory_space<vmem>>, %arg5: memref<1x64xf32, #tpu.memory_space<vmem>>, %arg6: memref<64x16xbf16, #tpu.memory_space<vmem>>, %arg7: memref<1x16xf32, #tpu.memory_space<vmem>>, %arg8: memref<16x16xf32, #tpu.memory_space<vmem>>) attributes {dimension_semantics = [#tpu.dimension_semantics<parallel>], iteration_bounds = array<i64: 2>, scalar_prefetch = 0 : i64, scratch_operands = 0 : i64, tpu.core_type = #tpu.core_type<tc>, window_params = [{transform_indices = @transform_0, window_bounds = array<i64: 16, 32>}, {pipeline_mode = #tpu.pipeline_mode<synchronous>, transform_indices = @transform_1, window_bounds = array<i64: 32, 64>}, {pipeline_mode = #tpu.pipeline_mode<synchronous>, transform_indices = @transform_2, window_bounds = array<i64: 1, 64>}, {pipeline_mode = #tpu.pipeline_mode<synchronous>, transform_indices = @transform_3, window_bounds = array<i64: 64, 64>}, {pipeline_mode = #tpu.pipeline_mode<synchronous>, transform_indices = @transform_4, window_bounds = array<i64: 1, 64>}, {pipeline_mode = #tpu.pipeline_mode<synchronous>, transform_indices = @transform_5, window_bounds = array<i64: 64, 16>}, {pipeline_mode = #tpu.pipeline_mode<synchronous>, transform_indices = @transform_6, window_bounds = array<i64: 1, 16>}, {transform_indices = @transform_7, window_bounds = array<i64: 16, 16>}]} {
    %c0 = arith.constant 0 : index
    %c0_0 = arith.constant 0 : index
    %0 = vector.load %arg1[%c0, %c0_0] : memref<16x32xf32, #tpu.memory_space<vmem>>, vector<16x32xf32>
    %c0_1 = arith.constant 0 : index
    %c0_2 = arith.constant 0 : index
    %1 = vector.load %arg2[%c0_1, %c0_2] : memref<32x64xbf16, #tpu.memory_space<vmem>>, vector<32x64xbf16>
    %c0_3 = arith.constant 0 : index
    %c0_4 = arith.constant 0 : index
    %2 = vector.load %arg3[%c0_3, %c0_4] : memref<1x64xf32, #tpu.memory_space<vmem>>, vector<1x64xf32>
    %3 = arith.truncf %0 : vector<16x32xf32> to vector<16x32xbf16>
    %cst = arith.constant dense<0.000000e+00> : vector<16x64xf32>
    %4 = tpu.matmul %3, %1, %cst {dimension_numbers = #tpu.dot_dimension_numbers<[1], [0], [0], [1], [0, 0, 1, 1], [], []>} : vector<16x32xbf16>, vector<32x64xbf16>, vector<16x64xf32> -> vector<16x64xf32>
    %5 = vector.broadcast %2 : vector<1x64xf32> to vector<16x64xf32>
    %6 = arith.addf %4, %5 : vector<16x64xf32>
    %cst_5 = arith.constant 0.000000e+00 : f32
    %7 = vector.broadcast %cst_5 : f32 to vector<16x64xf32>
    %8 = arith.maximumf %6, %7 : vector<16x64xf32>
    %9 = arith.truncf %8 : vector<16x64xf32> to vector<16x64xbf16>
    %c0_6 = arith.constant 0 : index
    %c0_7 = arith.constant 0 : index
    %10 = vector.load %arg4[%c0_6, %c0_7] : memref<64x64xbf16, #tpu.memory_space<vmem>>, vector<64x64xbf16>
    %c0_8 = arith.constant 0 : index
    %c0_9 = arith.constant 0 : index
    %11 = vector.load %arg5[%c0_8, %c0_9] : memref<1x64xf32, #tpu.memory_space<vmem>>, vector<1x64xf32>
    %cst_10 = arith.constant dense<0.000000e+00> : vector<16x64xf32>
    %12 = tpu.matmul %9, %10, %cst_10 {dimension_numbers = #tpu.dot_dimension_numbers<[1], [0], [0], [1], [0, 0, 1, 1], [], []>} : vector<16x64xbf16>, vector<64x64xbf16>, vector<16x64xf32> -> vector<16x64xf32>
    %13 = vector.broadcast %11 : vector<1x64xf32> to vector<16x64xf32>
    %14 = arith.addf %12, %13 : vector<16x64xf32>
    %cst_11 = arith.constant 0.000000e+00 : f32
    %15 = vector.broadcast %cst_11 : f32 to vector<16x64xf32>
    %16 = arith.maximumf %14, %15 : vector<16x64xf32>
    %17 = arith.truncf %16 : vector<16x64xf32> to vector<16x64xbf16>
    %c0_12 = arith.constant 0 : index
    %c0_13 = arith.constant 0 : index
    %18 = vector.load %arg6[%c0_12, %c0_13] : memref<64x16xbf16, #tpu.memory_space<vmem>>, vector<64x16xbf16>
    %c0_14 = arith.constant 0 : index
    %c0_15 = arith.constant 0 : index
    %19 = vector.load %arg7[%c0_14, %c0_15] : memref<1x16xf32, #tpu.memory_space<vmem>>, vector<1x16xf32>
    %cst_16 = arith.constant dense<0.000000e+00> : vector<16x16xf32>
    %20 = tpu.matmul %17, %18, %cst_16 {dimension_numbers = #tpu.dot_dimension_numbers<[1], [0], [0], [1], [0, 0, 1, 1], [], []>} : vector<16x64xbf16>, vector<64x16xbf16>, vector<16x16xf32> -> vector<16x16xf32>
    %21 = vector.broadcast %19 : vector<1x16xf32> to vector<16x16xf32>
    %22 = arith.addf %20, %21 : vector<16x16xf32>
    %c0_17 = arith.constant 0 : index
    %c0_18 = arith.constant 0 : index
    %23 = vector.load %arg8[%c0_17, %c0_18] : memref<16x16xf32, #tpu.memory_space<vmem>>, vector<16x16xf32>
    tpu.vector_store %arg8[%c0_17, %c0_18], %22 {strides = array<i32>} : memref<16x16xf32, #tpu.memory_space<vmem>>, vector<16x16xf32>,
    return
  }
  func.func @transform_0(%arg0: i32) -> (i32, i32) {
    %c0_i32 = arith.constant 0 : i32
    %c0_i32_0 = arith.constant 0 : i32
    return %arg0, %c0_i32 : i32, i32
  }
  func.func @transform_1(%arg0: i32) -> (i32, i32) {
    %c0_i32 = arith.constant 0 : i32
    %c0_i32_0 = arith.constant 0 : i32
    %c0_i32_1 = arith.constant 0 : i32
    return %c0_i32, %c0_i32_0 : i32, i32
  }
  func.func @transform_2(%arg0: i32) -> (i32, i32) {
    %c0_i32 = arith.constant 0 : i32
    %c0_i32_0 = arith.constant 0 : i32
    %c0_i32_1 = arith.constant 0 : i32
    return %c0_i32, %c0_i32_0 : i32, i32
  }
  func.func @transform_3(%arg0: i32) -> (i32, i32) {
    %c0_i32 = arith.constant 0 : i32
    %c0_i32_0 = arith.constant 0 : i32
    %c0_i32_1 = arith.constant 0 : i32
    return %c0_i32, %c0_i32_0 : i32, i32
  }
  func.func @transform_4(%arg0: i32) -> (i32, i32) {
    %c0_i32 = arith.constant 0 : i32
    %c0_i32_0 = arith.constant 0 : i32
    %c0_i32_1 = arith.constant 0 : i32
    return %c0_i32, %c0_i32_0 : i32, i32
  }
  func.func @transform_5(%arg0: i32) -> (i32, i32) {
    %c0_i32 = arith.constant 0 : i32
    %c0_i32_0 = arith.constant 0 : i32
    %c0_i32_1 = arith.constant 0 : i32
    return %c0_i32, %c0_i32_0 : i32, i32
  }
  func.func @transform_6(%arg0: i32) -> (i32, i32) {
    %c0_i32 = arith.constant 0 : i32
    %c0_i32_0 = arith.constant 0 : i32
    %c0_i32_1 = arith.constant 0 : i32
    return %c0_i32, %c0_i32_0 : i32, i32
  }
  func.func @transform_7(%arg0: i32) -> (i32, i32) {
    %c0_i32 = arith.constant 0 : i32
    %c0_i32_0 = arith.constant 0 : i32
    return %arg0, %c0_i32 : i32, i32
  }
}

</mosaic_0001>

<bundles_post_ra>
// kernel: tpu_custom_call.1
= control target key start
LH: loop header
LB: loop body
LE: loop exit
PB: predicated region body
PF: predicated region fallthrough
CT: control target
= control target key end

     0   :  { %12 = vsyncpa [#allocation3], 0  ;;  %s1356_s0 = inlined_call_operand.hbm [shape: f32[18,32], index: 0, kind: input, shape index: {}]   ;;  %s1357_s1 = inlined_call_operand.vmem [shape: bf16[32,64], index: 1, kind: input, shape index: {}]   ;;  %s1358_s2 = inlined_call_operand.vmem [shape: f32[1,64], index: 2, kind: input, shape index: {}]   ;;  %s1359_s3 = inlined_call_operand.vmem [shape: bf16[64,64], index: 3, kind: input, shape index: {}]   ;;  %s1360_s4 = inlined_call_operand.vmem [shape: f32[1,64], index: 4, kind: input, shape index: {}]   ;;  %s1361_s5 = inlined_call_operand.vmem [shape: bf16[64,16], index: 5, kind: input, shape index: {}]   ;;  %s1362_s6 = inlined_call_operand.vmem [shape: f32[1,16], index: 6, kind: input, shape index: {}]   ;;  %s1363_s7 = inlined_call_operand.vmem [shape: f32[18,16], index: 7, kind: output, shape index: {}]  }
   0x1   :  { %14 = vsyncpa [#allocation3 + $0x1], 0  ;;  %s1166_s24 = smov 0   ;;  %s1168_s25 = smov 0  }
   0x2   :  { %s1170_s26 = smov 0   ;;  %s1172_s27 = smov 0  }
   0x3 LB: > { %s1185_s28 = sadd.s32 4294967295, %s1087_s27   ;;  %s1188_s29 = sadd.s32 1, %s1087_s27   ;;  %s1087_s27 = sphi %s1172_s27, %s1369_s27   ;;  %s1083_s26 = sphi %s1170_s26, %s1368_s26   ;;  %s1079_s25 = sphi %s1168_s25, %s1367_s25   ;;  %s1075_s24 = sphi %s1166_s24, %s1366_s24  }
   0x4   : > { %s24_s30 = ssub.s32 %s1087_s27, %s1188_s29  ;;  %s27_s8 = sadd.s32 1, %s1083_s26 }
   0x5   : > { %p25_p0 = scmp.eq.s32.totalorder %s24_s30, 0  ;;  %p34_p1 = scmp.ne.s32.totalorder %s1083_s26, %s1079_s25 }
   0x6   : > { %p35_p2 = scmp.eq.s32.totalorder %s1087_s27, 0  ;;  %p40_p3 = scmp.ne.s32.totalorder %s1079_s25, %s1075_s24 }
   0x7   : > { %s1198_s9 = scalar_select %p25_p0, %s1083_s26, %s27_s8  }
   0x8   : > { %p36_p4 = por %p35_p2, %p34_p1  ;;  %p41_p5 = scmp.eq.s32.totalorder %s1185_s28, 0 }
   0x9   : > { %p190_p6 = scmp.eq.s32.totalorder %s1185_s28, 1  ;;  %p789_p9 = scmp.ge.s32.totalorder %s1087_s27, 2 }
   0xa   : > { %p1202_p7 = por %p41_p5, %p40_p3 }
   0xb   : > { %p1206_p8 = por %p190_p6, %p34_p1  ;;  %230 = sbr.rel (%p789_p9) target bundleno = 53 (0x35), region = 40 }
  0x12   : > { %233 = sbr.rel (!%p36_p4) target bundleno = 53 (0x35), region = 44  ;;  %s234_s12 = sand.u32 (%p36_p4), 1, %s1083_s26  }
  0x13   : > { %s791_s13 = sshll.u32 (%p36_p4), %s1087_s27, 1  ;;  %s790_s14 = sshll.u32 (%p36_p4), %s234_s12, 4 }
  0x14   : > { %s240_s15 = ssub.s32 (%p36_p4), 3, %s791_s13  ;;  %s1216_s18 = scalar_lea.sflag (%p36_p4), [#allocation3], %s234_s12 }
  0x15   : > { %p241_p10 = scmp.lt.s32.totalorder (%p36_p4), %s240_s15, 2  ;;  %s238_s19 = scalar_lea.vmem (%p36_p4), [#allocation2], %s790_s14 }
  0x19   : > { %s1371_s15 = smov (!%p241_p10, %s240_s15), 2 }
  0x1a   : > { %s1213_s16 = sshll.u32 %s1371_s15, 7 }
  0x1b   : > { %s245_s17 = ssub.s32 256, %s1213_s16 }
  0x1c   : > { %246 = vsyncadd %s1216_s18, %s245_s17  ;;  %p793_p11 = scmp.ne.s32.totalorder %s1213_s16, 0  ;;  %s833_s20 = sshll.u32 %s1087_s27, 8 }
  0x1d   : > { %s1224_s23 = scalar_lea.hbm %s1356_s0, %s833_s20  ;;  %s251_s24 = sshll.u32 %s238_s19, 4  ;;  %s1226_s24 = int_to_ptr.vmem [resolvable:$true] %s251_s24 }
  0x1e   : > { %s993_s30 = scalar_lea.hbm %s1224_s23, %s1213_s16  ;;  %s997_s13 = scalar_lea.hbm %s1356_s0, 384 }
  0x1f   : > { %p994_p12 = scmp.ne.s32.totalorder %s1224_s23, %s993_s30  ;;  %p998_p1 = scmp.lt.u32.totalorder %s1224_s23, %s1356_s0 }
  0x20   : > { %p999_p2 = scmp.lt.u32.totalorder %s997_s13, %s993_s30  ;;  %p1001_p4 = scmp.lt.u32.totalorder %s993_s30, %s1224_s23 }
  0x21   : > { %p995_p13 = pnand %p994_p12, %p793_p11 }
  0x22   : > { %p1000_p3 = por %p999_p2, %p998_p1 }
  0x23   : > { %p996_p0 = pneg %p995_p13 }
  0x24   : > { %p1002_p5 = por %p1001_p4, %p1000_p3 }
  0x26   : > { %p1003_p6 = pnand %p1002_p5, %p996_p0 }
  0x28   : > { %1006 = shalt.err (!%p1003_p6)
}
  0x29   : > { %s1007_s17 = scalar_lea.vmem %s1226_s24, %s1213_s16  ;;  %s1121_s19 = smov [#allocation2]  }
  0x2a   : > { %p1008_p9 = scmp.ne.s32.totalorder %s1226_s24, %s1007_s17  ;;  %s1011_s20 = sshll.u32 %s1121_s19, 4  ;;  %s1012_s20 = int_to_ptr.vmem [resolvable:$false] %s1011_s20 }
  0x2b   : > { %s1013_s21 = scalar_lea.vmem %s1012_s20, 512  ;;  %p1014_p13 = scmp.lt.s32.totalorder %s1226_s24, %s1012_s20 }
  0x2c   : > { %p1009_p10 = pnand %p1008_p9, %p793_p11  ;;  %p1015_p1 = scmp.lt.s32.totalorder %s1013_s21, %s1007_s17 }
  0x2e   : > { %p1010_p12 = pneg %p1009_p10  ;;  %p1016_p2 = por %p1015_p1, %p1014_p13 }
  0x30   : > { %p1017_p3 = pnand %p1016_p2, %p1010_p12 }
  0x32   : > { %1020 = shalt.err (!%p1017_p3)
}
  0x33   : > { %s1122_s22 = smov 128   ;;  %s1123_s30 = smov 8  }
  0x34   : > { %257 = dma.hbm_to_vmem [thread:$0]  (%p793_p11), %s1224_s23, %s1213_s16, %s1226_s24, %s1216_s18, %s1122_s22, %s1122_s22, %s1123_s30  }
  0x35 PF: > { %p797_p0 = scmp.ge.s32.totalorder %s1087_s27, 1  ;;  %p259_p4 = scmp.lt.s32.totalorder %s1087_s27, 3 }
  0x37   : > { %p260_p5 = pnand %p797_p0, %p259_p4 }
  0x38   : > { %s265_s8 = sand.u32 (!%p260_p5), 1, %s1079_s25  }
  0x39   : > { %263 = sbr.rel (%p260_p5) target bundleno = 781 (0x30d), region = 48  ;;  %s1256_s12 = sshll.u32 (!%p260_p5), %s265_s8, 4 }
  0x3a   : > { %s266_s13 = scalar_lea.sflag (!%p260_p5), [#allocation3], %s265_s8  ;;  %s269_s14 = scalar_lea.vmem (!%p260_p5), [#allocation2], %s1256_s12 }
  0x40   : > { %1070 = dma.done.wait (%p1202_p7), %s266_s13, 256  }
  0x41   : > { %1072 = vsyncadd (%p1202_p7), %s266_s13, 4294967040  ;;  %v1124_v0 = vmov 0.0   ;;  %vm1125_vm0 = vmmov 0   ;;  %v983_v1 = vld [vmem:[%s1357_s1] sm:$0xff]   ;;  %v984_v2 = vld [vmem:[%s1357_s1 + $0x8] sm:$0xff]   ;;  %vm336_vm1 = vcmask 261120  }
  0x42   : > { %850 = vmatprep.subr.bf16.mxu0 %v1124_v0  ;;  %854 = vmatprep.mubr.msk.bf16.mxu0 %vm1125_vm0, %v1124_v0  ;;  %v310_v3 = vld [vmem:[%s269_s14] sm:$0xff]  ;;  %v311_v4 = vld [vmem:[%s269_s14 + $0x8] sm:$0xff]  ;;  %vm423_vm2 = vcmask 523264   ;;  %vm554_vm3 = vcmask 130048   ;;  %s1308_s21 = scalar_lea.vmem [#allocation4], %s1256_s12   ;;  %s817_s22 = sshll.u32 (%p1206_p8), %s1185_s28, 1 }
  0x43   : > { %858 = vmatprep.subr.bf16.mxu1 %v1124_v0  ;;  %866 = vmatprep.mubr.msk.bf16.mxu1 %vm1125_vm0, %v1124_v0  ;;  %v985_v5 = vld [vmem:[%s1359_s3] sm:$0xff]   ;;  %v986_v6 = vld [vmem:[%s1359_s3 + $0x8] sm:$0xff]   ;;  %v317_v7 = vpack.c.bf16 %v311_v4, %v310_v3  ;;  %v987_v8 = vld [vmem:[%s1359_s3 + $0x10] sm:$0xff]   ;;  %s834_s30 = sshll.u32 (%p1206_p8), %s1185_s28, 4  ;;  %s565_s8 = ssub.s32 (%p1206_p8), 3, %s817_s22 }
  0x44   : > { %851 = vmatpush3.bf16.msra.mxu0 %v983_v1  ;;  %859 = vmatpush3.bf16.msra.mxu1 %v985_v5  ;;  %v988_v9 = vld [vmem:[%s1359_s3 + $0x18] sm:$0xff]   ;;  %v989_v10 = vld [vmem:[%s1361_s5] sm:$0xff]   ;;  %v990_v11 = vld [vmem:[%s1361_s5 + $0x8] sm:$0xff]   ;;  %s1319_s27 = scalar_lea.vmem (%p1206_p8), %s1363_s7, %s834_s30   ;;  %p566_p7 = scmp.lt.s32.totalorder (%p1206_p8), %s565_s8, 2 }
  0x45   : > { %852 = vmatprep.subr.bf16.mxu0 %v1124_v0  ;;  %860 = vmatprep.subr.bf16.mxu1 %v1124_v0  ;;  %v800_v12 = vld [vmem:[%s1358_s2] ss:$0 sm:$0xff]  ;;  %v991_v22 = vld [vmem:[%s1361_s5 + $0x10] sm:$0xff]   ;;  %v992_v23 = vld [vmem:[%s1361_s5 + $0x18] sm:$0xff]  }
  0x46   : > { %v804_v24 = vld [vmem:[%s1360_s4] ss:$0 sm:$0xff] }
  0x47   : > { %v810_v34 = vld [vmem:[%s1362_s6] ss:$0 sm:$0xff] }
  0x48   : > { %853 = vmatpush3.bf16.msra.mxu0 %v984_v2  ;;  %861 = vmatpush3.bf16.msra.mxu1 %v986_v6 }
  0x49   : > { %870 = vmatprep.subr.bf16.mxu0 %v1124_v0  ;;  %862 = vmatprep.subr.bf16.mxu1 %v1124_v0 }
  0x4b   : > { %855 = vmatmul.mubr.msk.bf16.vlgmr.msra.gmra.mrb[0].mxu0 %vm336_vm1, %v317_v7 }
  0x4c   : > { %878 = vmatprep.mubr.msk.bf16.mxu0 %vm1125_vm0, %v1124_v0  ;;  %863 = vmatpush3.bf16.msra.mxu1 %v987_v8 }
  0x4d   : > { %864 = vmatprep.subr.bf16.mxu1 %v1124_v0  ;;  %871 = vmatpush3.bf16.msra.mxu0 %v989_v10 }
  0x4e   : > { %872 = vmatprep.subr.bf16.mxu0 %v1124_v0 }
  0x50   : > { %865 = vmatpush3.bf16.msra.mxu1 %v988_v9 }
  0x51   : > { %873 = vmatpush3.bf16.msra.mxu0 %v990_v11 }
  0x52   : > { %874 = vmatprep.subr.bf16.mxu0 %v1124_v0 }
  0x55   : > { %875 = vmatpush3.bf16.msra.mxu0 %v991_v22 }
  0x56   : > { %876 = vmatprep.subr.bf16.mxu0 %v1124_v0 }
  0x59   : > { %877 = vmatpush3.bf16.msra.mxu0 %v992_v23 }
 0x11e   : > { %v374_v13 = vpop.f32.mrb[0].mxu0 }
 0x11f   : > { %v375_v14 = vadd.f32 %v800_v12, %v374_v13  ;;  %v856_v15 = vpop.f32.mrb[1].mxu0 }
 0x120   : > { %v377_v16 = vpop.f32.mrb[2].mxu0 }
 0x121   : > { %v378_v17 = vadd.f32 %v800_v12, %v377_v16  ;;  %v857_v18 = vpop.f32.mrb[3].mxu0  ;;  %v381_v19 = vmax.f32 %v375_v14, 0.0 }
 0x123   : > { %v382_v20 = vmax.f32 %v378_v17, 0.0 }
 0x125   : > { %v383_v21 = vpack.c.bf16 %v382_v20, %v381_v19 }
 0x127   : > { %867 = vmatmul.mubr.msk.bf16.vlgmr.msra.gmra.mrb[0].mxu1 %vm423_vm2, %v383_v21 }
 0x1fa   : > { %v461_v25 = vpop.f32.mrb[0].mxu1 }
 0x1fb   : > { %v462_v26 = vadd.f32 %v804_v24, %v461_v25  ;;  %v868_v27 = vpop.f32.mrb[1].mxu1 }
 0x1fc   : > { %v464_v28 = vpop.f32.mrb[2].mxu1 }
 0x1fd   : > { %v465_v29 = vadd.f32 %v804_v24, %v464_v28  ;;  %v869_v30 = vpop.f32.mrb[3].mxu1  ;;  %v468_v31 = vmax.f32 %v462_v26, 0.0 }
 0x1ff   : > { %v469_v32 = vmax.f32 %v465_v29, 0.0 }
 0x201   : > { %v470_v33 = vpack.c.bf16 %v469_v32, %v468_v31 }
 0x203   : > { %879 = vmatmul.mubr.msk.bf16.vlgmr.msra.gmra.mrb[4].mxu0 %vm423_vm2, %v470_v33 }
 0x2d5   : > { %563 = sbr.rel (!%p1206_p8) target bundleno = 781 (0x30d), region = 56 }
 0x2d6   : > { %v547_v35 = vpop.f32.mrb[4].mxu0 }
 0x2d7   : > { %v548_v36 = vadd.f32 %v810_v34, %v547_v35  ;;  %v880_v37 = vpop.f32.mrb[5].mxu0 }
 0x2d8   : > { %v550_v38 = vpop.f32.mrb[6].mxu0 }
 0x2d9   : > { %555 = vst.msk [vmem:[%s1308_s21] sm:$0xff] %vm554_vm3, %v548_v36  ;;  %v551_v39 = vadd.f32 %v810_v34, %v550_v38  ;;  %v881_v40 = vpop.f32.mrb[7].mxu0 }
 0x2db   : > { %556 = vst.msk [vmem:[%s1308_s21 + $0x8] sm:$0xff] %vm554_vm3, %v551_v39 }
 0x2dc   : > { %s1373_s8 = smov (!%p566_p7, %s565_s8), 2 }
 0x2dd   : > { %s818_s12 = sshll.u32 %s1373_s8, 7 }
 0x2de   : > { %p821_p11 = scmp.eq.s32.totalorder %s818_s12, 0 }
 0x2df   : > { %s1325_s11 = sshrl.u32 (!%p821_p11), %s1373_s8, 1 }
 0x2e0   : > { %574 = sbr.rel (%p821_p11) target bundleno = 781 (0x30d), region = 60  ;;  %p822_p8 = scmp.le.s32.totalorder (!%p821_p11), %s1325_s11, 0 }
 0x2e7   : > { %740 = sbr.rel (%p822_p8) target bundleno = 760 (0x2f8), region = 142  ;;  %s1089_s28 = smov (!%p822_p8), %s1319_s27  }
 0x2e8   : > { %s1093_s16 = smov (!%p822_p8), %s1308_s21   ;;  %s1097_s18 = smov (!%p822_p8), 0  }
 0x2e9   : > { %s1101_s23 = smov (!%p822_p8), 0  }
 0x2ee LB: >> { %v638_v41 = vld [vmem:[%s1095_s16] sm:$0xff]  ;;  %v640_v42 = vld [vmem:[%s1095_s16 + $0x8] sm:$0xff]  ;;  %s642_s10 = sadd.s32 1, %s1099_s18  ;;  %s632_s23 = sadd.s32 1, %s1103_s23   ;;  %s1103_s23 = sphi %s1101_s23, %s632_s23   ;;  %s1099_s18 = sphi %s1097_s18, %s1098_s18   ;;  %s1095_s16 = sphi %s1093_s16, %s647_s16   ;;  %s1091_s28 = sphi %s1089_s28, %s648_s28  }
 0x2ef   : >> { %639 = vst [vmem:[%s1091_s28] sm:$0xff] %v638_v41  ;;  %641 = vst [vmem:[%s1091_s28 + $0x8] sm:$0xff] %v640_v42  ;;  %p643_p6 = scmp.ge.s32.totalorder %s642_s10, %s1325_s11  ;;  %p631_p9 = scmp.ge.s32.totalorder %s632_s23, %s1325_s11 }
 0x2f1   : >> { %s1375_s10 = smov (%p643_p6, %s642_s10), 0  ;;  %634 = sbr.rel (!%p631_p9) target bundleno = 750 (0x2ee), region = 148 }
 0x2f2   : >> { %s823_s24 = sshll.u32 %s1375_s10, 4  ;;  %s1098_s18 = smov %s1375_s10  }
 0x2f3   : >> { %s647_s16 = scalar_lea.vmem %s1308_s21, %s823_s24 [#allocation4]   ;;  %s648_s28 = scalar_lea.vmem %s1319_s27, %s823_s24  }
 0x2f8 PF: > { %s1335_s15 = sand.u32 1, %s1373_s8   ;;  %s835_s17 = sshll.u32 %s1325_s11, 4 }
 0x2f9   : > { %s653_s19 = scalar_lea.vmem %s1308_s21, %s835_s17 [#allocation4]   ;;  %s655_s20 = scalar_lea.vmem %s1319_s27, %s835_s17  }
 0x2fa   : > { %p828_p10 = scmp.le.s32.totalorder %s1335_s15, 0 }
 0x2fb   : > { %s1105_s22 = smov (!%p828_p10), %s655_s20   ;;  %s1109_s30 = smov (!%p828_p10), %s653_s19  }
 0x2fc   : > { %754 = sbr.rel (%p828_p10) target bundleno = 781 (0x30d), region = 153  ;;  %s1113_s13 = smov (!%p828_p10), 0  }
 0x2fd   : > { %s1117_s14 = smov (!%p828_p10), 0  }
 0x303 LB: >> { %v665_v43 = vld [vmem:[%s1111_s30] sm:$0xff]  ;;  %s667_s8 = sadd.s32 1, %s1115_s13  ;;  %s659_s14 = sadd.s32 1, %s1119_s14   ;;  %s1119_s14 = sphi %s1117_s14, %s659_s14   ;;  %s1115_s13 = sphi %s1113_s13, %s1114_s13   ;;  %s1111_s30 = sphi %s1109_s30, %s672_s30   ;;  %s1107_s22 = sphi %s1105_s22, %s673_s22  }
 0x304   : >> { %666 = vst [vmem:[%s1107_s22] sm:$0xff] %v665_v43  ;;  %p668_p12 = scmp.ge.s32.totalorder %s667_s8, %s1335_s15  ;;  %p658_p13 = scmp.ge.s32.totalorder %s659_s14, %s1335_s15 }
 0x306   : >> { %s1377_s8 = smov (%p668_p12, %s667_s8), 0  ;;  %661 = sbr.rel (!%p658_p13) target bundleno = 771 (0x303), region = 159 }
 0x307   : >> { %s829_s21 = sshll.u32 %s1377_s8, 3  ;;  %s1114_s13 = smov %s1377_s8  }
 0x308   : >> { %s672_s30 = scalar_lea.vmem %s653_s19, %s829_s21 [#allocation4]   ;;  %s673_s22 = scalar_lea.vmem %s655_s20, %s829_s21  }
 0x30d PF: > { %p17_p1 = scmp.ge.s32.totalorder %s1188_s29, 4   ;;  %s1366_s24 = smov %s1079_s25 }
 0x30e   : > { %s1367_s25 = smov %s1083_s26  ;;  %s1368_s26 = smov %s1198_s9 }
 0x30f   : > { %s1369_s27 = smov %s1188_s29  ;;  %19 = sbr.rel (!%p17_p1) target bundleno = 3 (0x3), region = 170 }
 0x316   :  { %689 = vsyncpa [#allocation3], 1 }
 0x317   :  { %691 = vsyncpa [#allocation3 + $0x1], 1 }

// kernel: tpu_custom_call.1
= control target key start
LH: loop header
LB: loop body
LE: loop exit
PB: predicated region body
PF: predicated region fallthrough
CT: control target
= control target key end

     0   :  { %12 = vsyncpa [#allocation3], 0  ;;  %s1356_s0 = inlined_call_operand.hbm [shape: f32[18,32], index: 0, kind: input, shape index: {}]   ;;  %s1357_s1 = inlined_call_operand.vmem [shape: bf16[32,64], index: 1, kind: input, shape index: {}]   ;;  %s1358_s2 = inlined_call_operand.vmem [shape: f32[1,64], index: 2, kind: input, shape index: {}]   ;;  %s1359_s3 = inlined_call_operand.vmem [shape: bf16[64,64], index: 3, kind: input, shape index: {}]   ;;  %s1360_s4 = inlined_call_operand.vmem [shape: f32[1,64], index: 4, kind: input, shape index: {}]   ;;  %s1361_s5 = inlined_call_operand.vmem [shape: bf16[64,16], index: 5, kind: input, shape index: {}]   ;;  %s1362_s6 = inlined_call_operand.vmem [shape: f32[1,16], index: 6, kind: input, shape index: {}]   ;;  %s1363_s7 = inlined_call_operand.vmem [shape: f32[18,16], index: 7, kind: output, shape index: {}]  }
   0x1   :  { %14 = vsyncpa [#allocation3 + $0x1], 0  ;;  %s1166_s24 = smov 0   ;;  %s1168_s25 = smov 0  }
   0x2   :  { %s1170_s26 = smov 0   ;;  %s1172_s27 = smov 0  }
   0x3 LB: > { %s1185_s28 = sadd.s32 4294967295, %s1087_s27   ;;  %s1188_s29 = sadd.s32 1, %s1087_s27   ;;  %s1087_s27 = sphi %s1172_s27, %s1369_s27   ;;  %s1083_s26 = sphi %s1170_s26, %s1368_s26   ;;  %s1079_s25 = sphi %s1168_s25, %s1367_s25   ;;  %s1075_s24 = sphi %s1166_s24, %s1366_s24  }
   0x4   : > { %s24_s30 = ssub.s32 %s1087_s27, %s1188_s29  ;;  %s27_s8 = sadd.s32 1, %s1083_s26 }
   0x5   : > { %p25_p0 = scmp.eq.s32.totalorder %s24_s30, 0  ;;  %p34_p1 = scmp.ne.s32.totalorder %s1083_s26, %s1079_s25 }
   0x6   : > { %p35_p2 = scmp.eq.s32.totalorder %s1087_s27, 0  ;;  %p40_p3 = scmp.ne.s32.totalorder %s1079_s25, %s1075_s24 }
   0x7   : > { %s1198_s9 = scalar_select %p25_p0, %s1083_s26, %s27_s8  }
   0x8   : > { %p36_p4 = por %p35_p2, %p34_p1  ;;  %p41_p5 = scmp.eq.s32.totalorder %s1185_s28, 0 }
   0x9   : > { %p190_p6 = scmp.eq.s32.totalorder %s1185_s28, 1  ;;  %p789_p9 = scmp.ge.s32.totalorder %s1087_s27, 2 }
   0xa   : > { %p1202_p7 = por %p41_p5, %p40_p3 }
   0xb   : > { %p1206_p8 = por %p190_p6, %p34_p1  ;;  %230 = sbr.rel (%p789_p9) target bundleno = 53 (0x35), region = 40 }
  0x12   : > { %233 = sbr.rel (!%p36_p4) target bundleno = 53 (0x35), region = 44  ;;  %s234_s12 = sand.u32 (%p36_p4), 1, %s1083_s26  }
  0x13   : > { %s791_s13 = sshll.u32 (%p36_p4), %s1087_s27, 1  ;;  %s790_s14 = sshll.u32 (%p36_p4), %s234_s12, 4 }
  0x14   : > { %s240_s15 = ssub.s32 (%p36_p4), 3, %s791_s13  ;;  %s1216_s18 = scalar_lea.sflag (%p36_p4), [#allocation3], %s234_s12 }
  0x15   : > { %p241_p10 = scmp.lt.s32.totalorder (%p36_p4), %s240_s15, 2  ;;  %s238_s19 = scalar_lea.vmem (%p36_p4), [#allocation2], %s790_s14 }
  0x19   : > { %s1371_s15 = smov (!%p241_p10, %s240_s15), 2 }
  0x1a   : > { %s1213_s16 = sshll.u32 %s1371_s15, 7 }
  0x1b   : > { %s245_s17 = ssub.s32 256, %s1213_s16 }
  0x1c   : > { %246 = vsyncadd %s1216_s18, %s245_s17  ;;  %p793_p11 = scmp.ne.s32.totalorder %s1213_s16, 0  ;;  %s833_s20 = sshll.u32 %s1087_s27, 8 }
  0x1d   : > { %s1224_s23 = scalar_lea.hbm %s1356_s0, %s833_s20  ;;  %s251_s24 = sshll.u32 %s238_s19, 4  ;;  %s1226_s24 = int_to_ptr.vmem [resolvable:$true] %s251_s24 }
  0x1e   : > { %s993_s30 = scalar_lea.hbm %s1224_s23, %s1213_s16  ;;  %s997_s13 = scalar_lea.hbm %s1356_s0, 384 }
  0x1f   : > { %p994_p12 = scmp.ne.s32.totalorder %s1224_s23, %s993_s30  ;;  %p998_p1 = scmp.lt.u32.totalorder %s1224_s23, %s1356_s0 }
  0x20   : > { %p999_p2 = scmp.lt.u32.totalorder %s997_s13, %s993_s30  ;;  %p1001_p4 = scmp.lt.u32.totalorder %s993_s30, %s1224_s23 }
  0x21   : > { %p995_p13 = pnand %p994_p12, %p793_p11 }
  0x22   : > { %p1000_p3 = por %p999_p2, %p998_p1 }
  0x23   : > { %p996_p0 = pneg %p995_p13 }
  0x24   : > { %p1002_p5 = por %p1001_p4, %p1000_p3 }
  0x26   : > { %p1003_p6 = pnand %p1002_p5, %p996_p0 }
  0x28   : > { %1006 = shalt.err (!%p1003_p6)
}
  0x29   : > { %s1007_s17 = scalar_lea.vmem %s1226_s24, %s1213_s16  ;;  %s1121_s19 = smov [#allocation2]  }
  0x2a   : > { %p1008_p9 = scmp.ne.s32.totalorder %s1226_s24, %s1007_s17  ;;  %s1011_s20 = sshll.u32 %s1121_s19, 4  ;;  %s1012_s20 = int_to_ptr.vmem [resolvable:$false] %s1011_s20 }
  0x2b   : > { %s1013_s21 = scalar_lea.vmem %s1012_s20, 512  ;;  %p1014_p13 = scmp.lt.s32.totalorder %s1226_s24, %s1012_s20 }
  0x2c   : > { %p1009_p10 = pnand %p1008_p9, %p793_p11  ;;  %p1015_p1 = scmp.lt.s32.totalorder %s1013_s21, %s1007_s17 }
  0x2e   : > { %p1010_p12 = pneg %p1009_p10  ;;  %p1016_p2 = por %p1015_p1, %p1014_p13 }
  0x30   : > { %p1017_p3 = pnand %p1016_p2, %p1010_p12 }
  0x32   : > { %1020 = shalt.err (!%p1017_p3)
}
  0x33   : > { %s1122_s22 = smov 128   ;;  %s1123_s30 = smov 8  }
  0x34   : > { %257 = dma.hbm_to_vmem [thread:$0]  (%p793_p11), %s1224_s23, %s1213_s16, %s1226_s24, %s1216_s18, %s1122_s22, %s1122_s22, %s1123_s30  }
  0x35 PF: > { %p797_p0 = scmp.ge.s32.totalorder %s1087_s27, 1  ;;  %p259_p4 = scmp.lt.s32.totalorder %s1087_s27, 3 }
  0x37   : > { %p260_p5 = pnand %p797_p0, %p259_p4 }
  0x38   : > { %s265_s8 = sand.u32 (!%p260_p5), 1, %s1079_s25  }
  0x39   : > { %263 = sbr.rel (%p260_p5) target bundleno = 781 (0x30d), region = 48  ;;  %s1256_s12 = sshll.u32 (!%p260_p5), %s265_s8, 4 }
  0x3a   : > { %s266_s13 = scalar_lea.sflag (!%p260_p5), [#allocation3], %s265_s8  ;;  %s269_s14 = scalar_lea.vmem (!%p260_p5), [#allocation2], %s1256_s12 }
  0x40   : > { %1070 = dma.done.wait (%p1202_p7), %s266_s13, 256  }
  0x41   : > { %1072 = vsyncadd (%p1202_p7), %s266_s13, 4294967040  ;;  %v1124_v0 = vmov 0.0   ;;  %vm1125_vm0 = vmmov 0   ;;  %v983_v1 = vld [vmem:[%s1357_s1] sm:$0xff]   ;;  %v984_v2 = vld [vmem:[%s1357_s1 + $0x8] sm:$0xff]   ;;  %vm336_vm1 = vcmask 261120  }
  0x42   : > { %850 = vmatprep.subr.bf16.mxu0 %v1124_v0  ;;  %854 = vmatprep.mubr.msk.bf16.mxu0 %vm1125_vm0, %v1124_v0  ;;  %v310_v3 = vld [vmem:[%s269_s14] sm:$0xff]  ;;  %v311_v4 = vld [vmem:[%s269_s14 + $0x8] sm:$0xff]  ;;  %vm423_vm2 = vcmask 523264   ;;  %vm554_vm3 = vcmask 130048   ;;  %s1308_s21 = scalar_lea.vmem [#allocation4], %s1256_s12   ;;  %s817_s22 = sshll.u32 (%p1206_p8), %s1185_s28, 1 }
  0x43   : > { %858 = vmatprep.subr.bf16.mxu1 %v1124_v0  ;;  %866 = vmatprep.mubr.msk.bf16.mxu1 %vm1125_vm0, %v1124_v0  ;;  %v985_v5 = vld [vmem:[%s1359_s3] sm:$0xff]   ;;  %v986_v6 = vld [vmem:[%s1359_s3 + $0x8] sm:$0xff]   ;;  %v317_v7 = vpack.c.bf16 %v311_v4, %v310_v3  ;;  %v987_v8 = vld [vmem:[%s1359_s3 + $0x10] sm:$0xff]   ;;  %s834_s30 = sshll.u32 (%p1206_p8), %s1185_s28, 4  ;;  %s565_s8 = ssub.s32 (%p1206_p8), 3, %s817_s22 }
  0x44   : > { %851 = vmatpush3.bf16.msra.mxu0 %v983_v1  ;;  %859 = vmatpush3.bf16.msra.mxu1 %v985_v5  ;;  %v988_v9 = vld [vmem:[%s1359_s3 + $0x18] sm:$0xff]   ;;  %v989_v10 = vld [vmem:[%s1361_s5] sm:$0xff]   ;;  %v990_v11 = vld [vmem:[%s1361_s5 + $0x8] sm:$0xff]   ;;  %s1319_s27 = scalar_lea.vmem (%p1206_p8), %s1363_s7, %s834_s30   ;;  %p566_p7 = scmp.lt.s32.totalorder (%p1206_p8), %s565_s8, 2 }
  0x45   : > { %852 = vmatprep.subr.bf16.mxu0 %v1124_v0  ;;  %860 = vmatprep.subr.bf16.mxu1 %v1124_v0  ;;  %v800_v12 = vld [vmem:[%s1358_s2] ss:$0 sm:$0xff]  ;;  %v991_v22 = vld [vmem:[%s1361_s5 + $0x10] sm:$0xff]   ;;  %v992_v23 = vld [vmem:[%s1361_s5 + $0x18] sm:$0xff]  }
  0x46   : > { %v804_v24 = vld [vmem:[%s1360_s4] ss:$0 sm:$0xff] }
  0x47   : > { %v810_v34 = vld [vmem:[%s1362_s6] ss:$0 sm:$0xff] }
  0x48   : > { %853 = vmatpush3.bf16.msra.mxu0 %v984_v2  ;;  %861 = vmatpush3.bf16.msra.mxu1 %v986_v6 }
  0x49   : > { %870 = vmatprep.subr.bf16.mxu0 %v1124_v0  ;;  %862 = vmatprep.subr.bf16.mxu1 %v1124_v0 }
  0x4b   : > { %855 = vmatmul.mubr.msk.bf16.vlgmr.msra.gmra.mrb[0].mxu0 %vm336_vm1, %v317_v7 }
  0x4c   : > { %878 = vmatprep.mubr.msk.bf16.mxu0 %vm1125_vm0, %v1124_v0  ;;  %863 = vmatpush3.bf16.msra.mxu1 %v987_v8 }
  0x4d   : > { %864 = vmatprep.subr.bf16.mxu1 %v1124_v0  ;;  %871 = vmatpush3.bf16.msra.mxu0 %v989_v10 }
  0x4e   : > { %872 = vmatprep.subr.bf16.mxu0 %v1124_v0 }
  0x50   : > { %865 = vmatpush3.bf16.msra.mxu1 %v988_v9 }
  0x51   : > { %873 = vmatpush3.bf16.msra.mxu0 %v990_v11 }
  0x52   : > { %874 = vmatprep.subr.bf16.mxu0 %v1124_v0 }
  0x55   : > { %875 = vmatpush3.bf16.msra.mxu0 %v991_v22 }
  0x56   : > { %876 = vmatprep.subr.bf16.mxu0 %v1124_v0 }
  0x59   : > { %877 = vmatpush3.bf16.msra.mxu0 %v992_v23 }
 0x11e   : > { %v374_v13 = vpop.f32.mrb[0].mxu0 }
 0x11f   : > { %v375_v14 = vadd.f32 %v800_v12, %v374_v13  ;;  %v856_v15 = vpop.f32.mrb[1].mxu0 }
 0x120   : > { %v377_v16 = vpop.f32.mrb[2].mxu0 }
 0x121   : > { %v378_v17 = vadd.f32 %v800_v12, %v377_v16  ;;  %v857_v18 = vpop.f32.mrb[3].mxu0  ;;  %v381_v19 = vmax.f32 %v375_v14, 0.0 }
 0x123   : > { %v382_v20 = vmax.f32 %v378_v17, 0.0 }
 0x125   : > { %v383_v21 = vpack.c.bf16 %v382_v20, %v381_v19 }
 0x127   : > { %867 = vmatmul.mubr.msk.bf16.vlgmr.msra.gmra.mrb[0].mxu1 %vm423_vm2, %v383_v21 }
 0x1fa   : > { %v461_v25 = vpop.f32.mrb[0].mxu1 }
 0x1fb   : > { %v462_v26 = vadd.f32 %v804_v24, %v461_v25  ;;  %v868_v27 = vpop.f32.mrb[1].mxu1 }
 0x1fc   : > { %v464_v28 = vpop.f32.mrb[2].mxu1 }
 0x1fd   : > { %v465_v29 = vadd.f32 %v804_v24, %v464_v28  ;;  %v869_v30 = vpop.f32.mrb[3].mxu1  ;;  %v468_v31 = vmax.f32 %v462_v26, 0.0 }
 0x1ff   : > { %v469_v32 = vmax.f32 %v465_v29, 0.0 }
 0x201   : > { %v470_v33 = vpack.c.bf16 %v469_v32, %v468_v31 }
 0x203   : > { %879 = vmatmul.mubr.msk.bf16.vlgmr.msra.gmra.mrb[4].mxu0 %vm423_vm2, %v470_v33 }
 0x2d5   : > { %563 = sbr.rel (!%p1206_p8) target bundleno = 781 (0x30d), region = 56 }
 0x2d6   : > { %v547_v35 = vpop.f32.mrb[4].mxu0 }
 0x2d7   : > { %v548_v36 = vadd.f32 %v810_v34, %v547_v35  ;;  %v880_v37 = vpop.f32.mrb[5].mxu0 }
 0x2d8   : > { %v550_v38 = vpop.f32.mrb[6].mxu0 }
 0x2d9   : > { %555 = vst.msk [vmem:[%s1308_s21] sm:$0xff] %vm554_vm3, %v548_v36  ;;  %v551_v39 = vadd.f32 %v810_v34, %v550_v38  ;;  %v881_v40 = vpop.f32.mrb[7].mxu0 }
 0x2db   : > { %556 = vst.msk [vmem:[%s1308_s21 + $0x8] sm:$0xff] %vm554_vm3, %v551_v39 }
 0x2dc   : > { %s1373_s8 = smov (!%p566_p7, %s565_s8), 2 }
 0x2dd   : > { %s818_s12 = sshll.u32 %s1373_s8, 7 }
 0x2de   : > { %p821_p11 = scmp.eq.s32.totalorder %s818_s12, 0 }
 0x2df   : > { %s1325_s11 = sshrl.u32 (!%p821_p11), %s1373_s8, 1 }
 0x2e0   : > { %574 = sbr.rel (%p821_p11) target bundleno = 781 (0x30d), region = 60  ;;  %p822_p8 = scmp.le.s32.totalorder (!%p821_p11), %s1325_s11, 0 }
 0x2e7   : > { %740 = sbr.rel (%p822_p8) target bundleno = 760 (0x2f8), region = 142  ;;  %s1089_s28 = smov (!%p822_p8), %s1319_s27  }
 0x2e8   : > { %s1093_s16 = smov (!%p822_p8), %s1308_s21   ;;  %s1097_s18 = smov (!%p822_p8), 0  }
 0x2e9   : > { %s1101_s23 = smov (!%p822_p8), 0  }
 0x2ee LB: >> { %v638_v41 = vld [vmem:[%s1095_s16] sm:$0xff]  ;;  %v640_v42 = vld [vmem:[%s1095_s16 + $0x8] sm:$0xff]  ;;  %s642_s10 = sadd.s32 1, %s1099_s18  ;;  %s632_s23 = sadd.s32 1, %s1103_s23   ;;  %s1103_s23 = sphi %s1101_s23, %s632_s23   ;;  %s1099_s18 = sphi %s1097_s18, %s1098_s18   ;;  %s1095_s16 = sphi %s1093_s16, %s647_s16   ;;  %s1091_s28 = sphi %s1089_s28, %s648_s28  }
 0x2ef   : >> { %639 = vst [vmem:[%s1091_s28] sm:$0xff] %v638_v41  ;;  %641 = vst [vmem:[%s1091_s28 + $0x8] sm:$0xff] %v640_v42  ;;  %p643_p6 = scmp.ge.s32.totalorder %s642_s10, %s1325_s11  ;;  %p631_p9 = scmp.ge.s32.totalorder %s632_s23, %s1325_s11 }
 0x2f1   : >> { %s1375_s10 = smov (%p643_p6, %s642_s10), 0  ;;  %634 = sbr.rel (!%p631_p9) target bundleno = 750 (0x2ee), region = 148 }
 0x2f2   : >> { %s823_s24 = sshll.u32 %s1375_s10, 4  ;;  %s1098_s18 = smov %s1375_s10  }
 0x2f3   : >> { %s647_s16 = scalar_lea.vmem %s1308_s21, %s823_s24 [#allocation4]   ;;  %s648_s28 = scalar_lea.vmem %s1319_s27, %s823_s24  }
 0x2f8 PF: > { %s1335_s15 = sand.u32 1, %s1373_s8   ;;  %s835_s17 = sshll.u32 %s1325_s11, 4 }
 0x2f9   : > { %s653_s19 = scalar_lea.vmem %s1308_s21, %s835_s17 [#allocation4]   ;;  %s655_s20 = scalar_lea.vmem %s1319_s27, %s835_s17  }
 0x2fa   : > { %p828_p10 = scmp.le.s32.totalorder %s1335_s15, 0 }
 0x2fb   : > { %s1105_s22 = smov (!%p828_p10), %s655_s20   ;;  %s1109_s30 = smov (!%p828_p10), %s653_s19  }
 0x2fc   : > { %754 = sbr.rel (%p828_p10) target bundleno = 781 (0x30d), region = 153  ;;  %s1113_s13 = smov (!%p828_p10), 0  }
 0x2fd   : > { %s1117_s14 = smov (!%p828_p10), 0  }
 0x303 LB: >> { %v665_v43 = vld [vmem:[%s1111_s30] sm:$0xff]  ;;  %s667_s8 = sadd.s32 1, %s1115_s13  ;;  %s659_s14 = sadd.s32 1, %s1119_s14   ;;  %s1119_s14 = sphi %s1117_s14, %s659_s14   ;;  %s1115_s13 = sphi %s1113_s13, %s1114_s13   ;;  %s1111_s30 = sphi %s1109_s30, %s672_s30   ;;  %s1107_s22 = sphi %s1105_s22, %s673_s22  }
 0x304   : >> { %666 = vst [vmem:[%s1107_s22] sm:$0xff] %v665_v43  ;;  %p668_p12 = scmp.ge.s32.totalorder %s667_s8, %s1335_s15  ;;  %p658_p13 = scmp.ge.s32.totalorder %s659_s14, %s1335_s15 }
 0x306   : >> { %s1377_s8 = smov (%p668_p12, %s667_s8), 0  ;;  %661 = sbr.rel (!%p658_p13) target bundleno = 771 (0x303), region = 159 }
 0x307   : >> { %s829_s21 = sshll.u32 %s1377_s8, 3  ;;  %s1114_s13 = smov %s1377_s8  }
 0x308   : >> { %s672_s30 = scalar_lea.vmem %s653_s19, %s829_s21 [#allocation4]   ;;  %s673_s22 = scalar_lea.vmem %s655_s20, %s829_s21  }
 0x30d PF: > { %p17_p1 = scmp.ge.s32.totalorder %s1188_s29, 4   ;;  %s1366_s24 = smov %s1079_s25 }
 0x30e   : > { %s1367_s25 = smov %s1083_s26  ;;  %s1368_s26 = smov %s1198_s9 }
 0x30f   : > { %s1369_s27 = smov %s1188_s29  ;;  %19 = sbr.rel (!%p17_p1) target bundleno = 3 (0x3), region = 170 }
 0x316   :  { %689 = vsyncpa [#allocation3], 1 }
 0x317   :  { %691 = vsyncpa [#allocation3 + $0x1], 1 }

</bundles_post_ra>
